<compile_context>
chip_gen: v6e
topology: v6e:2x2x1
jax: 0.10.0
libtpu: 0.0.40
codegen_flags: <defaults>
</compile_context>

<pallas_src>
import functools
import math

import jax
import jax.numpy as jnp
from jax import lax
from jax.experimental import pallas as pl
from jax.experimental.pallas import tpu as pltpu


def _self_attention_kernel(x_ref, wq_ref, bq_ref, wk_ref, bk_ref, wv_ref, bv_ref,
                           out_ref, attn_ref, kv_ref,
                           *, tq, inv_sqrt_d, compute_dtype):
    """x_ref: (S, D) full sequence of one batch element (constant across qi).
    w*_ref: (D, D) projection weights (already in compute_dtype).
    b*_ref: (1, D) f32 biases.
    out_ref: (TQ, D), attn_ref: (TQ, S) query-tile outputs.
    kv_ref: (2, S, D) VMEM scratch in compute_dtype holding K (index 0) and V
    (index 1), written once per batch element at qi == 0."""
    qi = pl.program_id(1)

    # K / V projections: once per batch element, cached in VMEM across qi.
    @pl.when(qi == 0)
    def _():
        x_all = x_ref[...].astype(compute_dtype)                      # (S, D)
        k = jnp.dot(x_all, wk_ref[...],
                    preferred_element_type=jnp.float32) + bk_ref[...]
        v = jnp.dot(x_all, wv_ref[...],
                    preferred_element_type=jnp.float32) + bv_ref[...]
        kv_ref[0] = k.astype(kv_ref.dtype)
        kv_ref[1] = v.astype(kv_ref.dtype)

    # Q projection for this query tile only (no all-S Q cache).
    row0 = pl.multiple_of(qi * tq, tq)
    x_tile = x_ref[pl.ds(row0, tq), :].astype(compute_dtype)          # (TQ, D)
    q = jnp.dot(x_tile, wq_ref[...],
                preferred_element_type=jnp.float32) + bq_ref[...]     # (TQ, D) f32
    # Scale Q (TQ*D elements) instead of the (TQ, S) score matrix.
    q = (q * inv_sqrt_d).astype(compute_dtype)

    k = kv_ref[0]                                                      # (S, D)
    v = kv_ref[1]                                                      # (S, D)

    # Q @ K^T without materializing a transpose: contract the last dims.
    scores = lax.dot_general(
        q, k, dimension_numbers=(((1,), (1,)), ((), ())),
        preferred_element_type=jnp.float32)                            # (TQ, S)

    # Numerically-stable softmax over the full key extent.  Exact division
    # (one f32 reciprocal per row) so attention rows sum to 1 and the returned
    # weights match PyTorch's softmax.
    m = jnp.max(scores, axis=-1, keepdims=True)
    p = jnp.exp(scores - m)
    denom = jnp.sum(p, axis=-1, keepdims=True)
    inv = 1.0 / denom                                                  # (TQ, 1)
    attn = p * inv                                                     # (TQ, S) f32

    out = jnp.dot(attn.astype(compute_dtype), v,
                  preferred_element_type=jnp.float32)                  # (TQ, D)

    out_ref[...] = out.astype(out_ref.dtype)
    attn_ref[...] = attn.astype(attn_ref.dtype)


def _vmem_capacity_bytes():
    """Physical VMEM of the current TPU generation; conservative 64 MiB (v7x)
    fallback when the query is unavailable (e.g. interpret mode)."""
    try:
        info = pltpu.get_tpu_info()
        cap = getattr(info, "vmem_capacity_bytes", None)
        if cap:
            return int(cap)
    except Exception:
        pass
    return 64 * 1024 * 1024


def _choose_query_tile(S, D, mm_bytes, budget_bytes):
    """Largest MXU-friendly query tile that divides S and keeps the per-step
    VMEM footprint under the generation-aware budget."""
    f32 = 4
    fixed = (2 * S * D * f32            # double-buffered x block (f32)
             + 2 * S * D * mm_bytes     # persistent K|V scratch
             + 3 * D * D * mm_bytes     # weights (single-buffered, whole)
             + 3 * D * f32)             # biases
    if fixed >= budget_bytes:
        raise ValueError(
            f"SelfAttention Pallas kernel: fixed VMEM footprint ({fixed} bytes: "
            f"x block + K/V cache + weights) exceeds the VMEM budget "
            f"({budget_bytes} bytes). Stream K/V from HBM instead of caching "
            f"them for this (S={S}, D={D}).")

    # Prefer multiples of 256 (v6e/v7x MXU is 2x256^2), then 128 (v5e 4x128^2);
    # small tiles only when S itself is small.
    candidates = [t for t in (2048, 1024, 768, 512, 384, 256, 128)
                  if t <= S and S % t == 0]
    if not candidates:
        candidates = [t for t in (64, 32, 16, 8) if t <= S and S % t == 0]
    if not candidates:
        candidates = [S]

    for tq in candidates:
        step = (2 * tq * D * f32        # double-buffered out block
                + 2 * tq * S * f32      # double-buffered attn block
                + 2 * tq * S * f32      # scores + probs f32 intermediates
                + tq * S * mm_bytes     # probs cast for the P @ V matmul
                + 2 * tq * D * f32)     # Q accumulation + output tile
        if fixed + step <= budget_bytes:
            return tq
    return candidates[-1]


def self_attention(x, wq, bq, wk, bk, wv, bv, *, use_bf16_matmul=True):
    """x: (B, S, D); weights (D, D) pre-transposed; biases (1, D).
    Returns (outputs (B,S,D), attn_weights (B,S,S)) like the PyTorch module."""
    B, S, D = x.shape
    compute_dtype = jnp.bfloat16 if use_bf16_matmul else x.dtype
    mm_bytes = jnp.dtype(compute_dtype).itemsize

    cap = _vmem_capacity_bytes()
    budget = int(cap * 0.70)          # ~45 MiB on v7x, ~90 MiB on v5e/v6e
    vmem_limit = int(cap * 0.80)      # ~51 MiB on v7x, ~102 MiB on v5e/v6e

    tq = _choose_query_tile(S, D, mm_bytes, budget)
    nq = S // tq

    kernel = functools.partial(
        _self_attention_kernel, tq=tq,
        inv_sqrt_d=1.0 / math.sqrt(float(D)),
        compute_dtype=compute_dtype)

    # Grid-invariant operands: whole array in VMEM, single-buffered.
    vmem_whole = pl.BlockSpec(memory_space=pltpu.MemorySpace.VMEM)

    out_shape = (
        jax.ShapeDtypeStruct((B, S, D), x.dtype),   # outputs
        jax.ShapeDtypeStruct((B, S, S), x.dtype),   # attn_weights
    )

    wq_c = wq.astype(compute_dtype)
    wk_c = wk.astype(compute_dtype)
    wv_c = wv.astype(compute_dtype)

    return pl.pallas_call(
        kernel,
        out_shape=out_shape,
        grid=(B, nq),
        in_specs=[
            # Full sequence of one batch element (constant across qi -> one DMA
            # per batch element; single-buffering it via pl.Buffered(1) would
            # free S*D*4 more bytes if needed).
            pl.BlockSpec((None, S, D), lambda b, qi: (b, 0, 0)),
            vmem_whole,   # wq
            vmem_whole,   # bq
            vmem_whole,   # wk
            vmem_whole,   # bk
            vmem_whole,   # wv
            vmem_whole,   # bv
        ],
        out_specs=(
            pl.BlockSpec((None, tq, D), lambda b, qi: (b, qi, 0)),
            pl.BlockSpec((None, tq, S), lambda b, qi: (b, qi, 0)),
        ),
        scratch_shapes=[pltpu.VMEM((2, S, D), compute_dtype)],
        compiler_params=pltpu.CompilerParams(
            # batch axis parallel (megacore); the qi axis carries the K/V
            # scratch written at qi == 0, so it must stay "arbitrary".
            dimension_semantics=("parallel", "arbitrary"),
            vmem_limit_bytes=vmem_limit,
        ),
    )(x, wq_c, bq, wk_c, bk, wv_c, bv)


def _reference(x, wq, bq, wk, bk, wv, bv):
    q = x @ wq + bq
    k = x @ wk + bk
    v = x @ wv + bv
    s = jnp.einsum("bqd,bkd->bqk", q, k) / math.sqrt(float(x.shape[-1]))
    a = jax.nn.softmax(s, axis=-1)
    return jnp.einsum("bqk,bkd->bqd", a, v), a


if __name__ == "__main__":
    B, S, D = 2, 8, 32  # small demo shapes: batch=2, seq=8, hidden=32

    key = jax.random.PRNGKey(0)
    kx, kwq, kbq, kwk, kbk, kwv, kbv = jax.random.split(key, 7)

    # Deterministic init mirroring nn.Linear's uniform(-1/sqrt(in), 1/sqrt(in)).
    bound = 1.0 / math.sqrt(D)
    x = jax.random.normal(kx, (B, S, D), dtype=jnp.float32)
    # weights are stored already-transposed: (D_in, D_out)
    wq = jax.random.uniform(kwq, (D, D), jnp.float32, -bound, bound)
    wk = jax.random.uniform(kwk, (D, D), jnp.float32, -bound, bound)
    wv = jax.random.uniform(kwv, (D, D), jnp.float32, -bound, bound)
    bq = jax.random.uniform(kbq, (1, D), jnp.float32, -bound, bound)
    bk = jax.random.uniform(kbk, (1, D), jnp.float32, -bound, bound)
    bv = jax.random.uniform(kbv, (1, D), jnp.float32, -bound, bound)

    ref_out, ref_attn = _reference(x, wq, bq, wk, bk, wv, bv)

    # --- bf16 MXU fast path (default) ------------------------------------
    outputs, attn_weights = self_attention(x, wq, bq, wk, bk, wv, bv,
                                           use_bf16_matmul=True)
    outputs = jax.block_until_ready(outputs)
    attn_weights = jax.block_until_ready(attn_weights)

    assert outputs.shape == (B, S, D) and attn_weights.shape == (B, S, S)
    assert jnp.allclose(outputs, ref_out, atol=2e-2, rtol=2e-2)
    assert jnp.allclose(attn_weights, ref_attn, atol=2e-2, rtol=2e-2)
    # Exact softmax normalization: rows sum to 1.
    assert jnp.allclose(jnp.sum(attn_weights, axis=-1), 1.0, atol=1e-3)

    # --- strict f32 path (PyTorch-parity numerics) ------------------------
    out_f32, attn_f32 = self_attention(x, wq, bq, wk, bk, wv, bv,
                                       use_bf16_matmul=False)
    out_f32 = jax.block_until_ready(out_f32)
    attn_f32 = jax.block_until_ready(attn_f32)

    assert jnp.allclose(out_f32, ref_out, atol=1e-2, rtol=1e-2)
    assert jnp.allclose(attn_f32, ref_attn, atol=1e-2, rtol=1e-2)
    assert jnp.allclose(jnp.sum(attn_f32, axis=-1), 1.0, atol=1e-4)

    print("KERNEL_OK")
</pallas_src>

<mosaic_0001>
module attributes {stable_mosaic.version = 11 : i64} {
  func.func @_self_attention_kernel(%arg0: i32, %arg1: i32, %arg2: memref<1x8x32xf32, #tpu.memory_space<vmem>>, %arg3: memref<32x32xbf16, #tpu.memory_space<vmem>>, %arg4: memref<1x32xf32, #tpu.memory_space<vmem>>, %arg5: memref<32x32xbf16, #tpu.memory_space<vmem>>, %arg6: memref<1x32xf32, #tpu.memory_space<vmem>>, %arg7: memref<32x32xbf16, #tpu.memory_space<vmem>>, %arg8: memref<1x32xf32, #tpu.memory_space<vmem>>, %arg9: memref<1x8x32xf32, #tpu.memory_space<vmem>>, %arg10: memref<1x8x8xf32, #tpu.memory_space<vmem>>, %arg11: memref<2x8x32xbf16, #tpu.memory_space<vmem>>) attributes {dimension_semantics = [#tpu.dimension_semantics<parallel>, #tpu.dimension_semantics<arbitrary>], iteration_bounds = array<i64: 2, 1>, scalar_prefetch = 0 : i64, scratch_operands = 1 : i64, tpu.core_type = #tpu.core_type<tc>, window_params = [{transform_indices = @transform_0, window_bounds = array<i64: 1, 8, 32>}, {pipeline_mode = #tpu.pipeline_mode<synchronous>, transform_indices = @transform_1, window_bounds = array<i64: 32, 32>}, {pipeline_mode = #tpu.pipeline_mode<synchronous>, transform_indices = @transform_2, window_bounds = array<i64: 1, 32>}, {pipeline_mode = #tpu.pipeline_mode<synchronous>, transform_indices = @transform_3, window_bounds = array<i64: 32, 32>}, {pipeline_mode = #tpu.pipeline_mode<synchronous>, transform_indices = @transform_4, window_bounds = array<i64: 1, 32>}, {pipeline_mode = #tpu.pipeline_mode<synchronous>, transform_indices = @transform_5, window_bounds = array<i64: 32, 32>}, {pipeline_mode = #tpu.pipeline_mode<synchronous>, transform_indices = @transform_6, window_bounds = array<i64: 1, 32>}, {transform_indices = @transform_7, window_bounds = array<i64: 1, 8, 32>}, {transform_indices = @transform_8, window_bounds = array<i64: 1, 8, 8>}]} {
    %c0_i32 = arith.constant 0 : i32
    %0 = arith.cmpi eq, %arg1, %c0_i32 : i32
    %1 = arith.extui %0 : i1 to i32
    %c0_i32_0 = arith.constant 0 : i32
    %2 = arith.cmpi ne, %1, %c0_i32_0 : i32
    scf.if %2 {
      %c0_23 = arith.constant 0 : index
      %c0_24 = arith.constant 0 : index
      %c0_25 = arith.constant 0 : index
      %41 = vector.load %arg2[%c0_23, %c0_24, %c0_25] : memref<1x8x32xf32, #tpu.memory_space<vmem>>, vector<1x8x32xf32>
      %42 = vector.shape_cast %41 : vector<1x8x32xf32> to vector<8x32xf32>
      %43 = arith.truncf %42 : vector<8x32xf32> to vector<8x32xbf16>
      %c0_26 = arith.constant 0 : index
      %c0_27 = arith.constant 0 : index
      %44 = vector.load %arg5[%c0_26, %c0_27] : memref<32x32xbf16, #tpu.memory_space<vmem>>, vector<32x32xbf16>
      %cst_28 = arith.constant dense<0.000000e+00> : vector<8x32xf32>
      %45 = tpu.matmul %43, %44, %cst_28 {dimension_numbers = #tpu.dot_dimension_numbers<[1], [0], [0], [1], [0, 0, 1, 1], [], []>} : vector<8x32xbf16>, vector<32x32xbf16>, vector<8x32xf32> -> vector<8x32xf32>
      %c0_29 = arith.constant 0 : index
      %c0_30 = arith.constant 0 : index
      %46 = vector.load %arg6[%c0_29, %c0_30] : memref<1x32xf32, #tpu.memory_space<vmem>>, vector<1x32xf32>
      %47 = vector.broadcast %46 : vector<1x32xf32> to vector<8x32xf32>
      %48 = arith.addf %45, %47 : vector<8x32xf32>
      %c0_31 = arith.constant 0 : index
      %c0_32 = arith.constant 0 : index
      %49 = vector.load %arg7[%c0_31, %c0_32] : memref<32x32xbf16, #tpu.memory_space<vmem>>, vector<32x32xbf16>
      %cst_33 = arith.constant dense<0.000000e+00> : vector<8x32xf32>
      %50 = tpu.matmul %43, %49, %cst_33 {dimension_numbers = #tpu.dot_dimension_numbers<[1], [0], [0], [1], [0, 0, 1, 1], [], []>} : vector<8x32xbf16>, vector<32x32xbf16>, vector<8x32xf32> -> vector<8x32xf32>
      %c0_34 = arith.constant 0 : index
      %c0_35 = arith.constant 0 : index
      %51 = vector.load %arg8[%c0_34, %c0_35] : memref<1x32xf32, #tpu.memory_space<vmem>>, vector<1x32xf32>
      %52 = vector.broadcast %51 : vector<1x32xf32> to vector<8x32xf32>
      %53 = arith.addf %50, %52 : vector<8x32xf32>
      %54 = arith.truncf %48 : vector<8x32xf32> to vector<8x32xbf16>
      %c0_36 = arith.constant 0 : index
      %c0_37 = arith.constant 0 : index
      %c0_38 = arith.constant 0 : index
      %55 = vector.load %arg11[%c0_36, %c0_37, %c0_38] : memref<2x8x32xbf16, #tpu.memory_space<vmem>>, vector<1x8x32xbf16>
      %56 = vector.shape_cast %55 : vector<1x8x32xbf16> to vector<8x32xbf16>
      %57 = vector.shape_cast %54 : vector<8x32xbf16> to vector<1x8x32xbf16>
      tpu.vector_store %arg11[%c0_36, %c0_37, %c0_38], %57 {strides = array<i32>} : memref<2x8x32xbf16, #tpu.memory_space<vmem>>, vector<1x8x32xbf16>,
      %58 = arith.truncf %53 : vector<8x32xf32> to vector<8x32xbf16>
      %c1_39 = arith.constant 1 : index
      %c0_40 = arith.constant 0 : index
      %c0_41 = arith.constant 0 : index
      %59 = vector.load %arg11[%c1_39, %c0_40, %c0_41] : memref<2x8x32xbf16, #tpu.memory_space<vmem>>, vector<1x8x32xbf16>
      %60 = vector.shape_cast %59 : vector<1x8x32xbf16> to vector<8x32xbf16>
      %61 = vector.shape_cast %58 : vector<8x32xbf16> to vector<1x8x32xbf16>
      tpu.vector_store %arg11[%c1_39, %c0_40, %c0_41], %61 {strides = array<i32>} : memref<2x8x32xbf16, #tpu.memory_space<vmem>>, vector<1x8x32xbf16>,
    } else {
    }
    %c8_i32 = arith.constant 8 : i32
    %3 = arith.muli %arg1, %c8_i32 : i32
    %4 = tpu.assume_multiple %3, 8 : i32
    %c0 = arith.constant 0 : index
    %5 = arith.index_cast %4 : i32 to index
    %c0_1 = arith.constant 0 : index
    %6 = vector.load %arg2[%c0, %5, %c0_1] : memref<1x8x32xf32, #tpu.memory_space<vmem>>, vector<1x8x32xf32>
    %7 = vector.shape_cast %6 : vector<1x8x32xf32> to vector<8x32xf32>
    %8 = arith.truncf %7 : vector<8x32xf32> to vector<8x32xbf16>
    %c0_2 = arith.constant 0 : index
    %c0_3 = arith.constant 0 : index
    %9 = vector.load %arg3[%c0_2, %c0_3] : memref<32x32xbf16, #tpu.memory_space<vmem>>, vector<32x32xbf16>
    %cst = arith.constant dense<0.000000e+00> : vector<8x32xf32>
    %10 = tpu.matmul %8, %9, %cst {dimension_numbers = #tpu.dot_dimension_numbers<[1], [0], [0], [1], [0, 0, 1, 1], [], []>} : vector<8x32xbf16>, vector<32x32xbf16>, vector<8x32xf32> -> vector<8x32xf32>
    %c0_4 = arith.constant 0 : index
    %c0_5 = arith.constant 0 : index
    %11 = vector.load %arg4[%c0_4, %c0_5] : memref<1x32xf32, #tpu.memory_space<vmem>>, vector<1x32xf32>
    %12 = vector.broadcast %11 : vector<1x32xf32> to vector<8x32xf32>
    %13 = arith.addf %10, %12 : vector<8x32xf32>
    %cst_6 = arith.constant 0.176776692 : f32
    %14 = vector.broadcast %cst_6 : f32 to vector<8x32xf32>
    %15 = arith.mulf %13, %14 : vector<8x32xf32>
    %16 = arith.truncf %15 : vector<8x32xf32> to vector<8x32xbf16>
    %c0_7 = arith.constant 0 : index
    %c0_8 = arith.constant 0 : index
    %c0_9 = arith.constant 0 : index
    %17 = vector.load %arg11[%c0_7, %c0_8, %c0_9] : memref<2x8x32xbf16, #tpu.memory_space<vmem>>, vector<1x8x32xbf16>
    %18 = vector.shape_cast %17 : vector<1x8x32xbf16> to vector<8x32xbf16>
    %c1 = arith.constant 1 : index
    %c0_10 = arith.constant 0 : index
    %c0_11 = arith.constant 0 : index
    %19 = vector.load %arg11[%c1, %c0_10, %c0_11] : memref<2x8x32xbf16, #tpu.memory_space<vmem>>, vector<1x8x32xbf16>
    %20 = vector.shape_cast %19 : vector<1x8x32xbf16> to vector<8x32xbf16>
    %cst_12 = arith.constant dense<0.000000e+00> : vector<8x8xf32>
    %21 = tpu.matmul %16, %18, %cst_12 {dimension_numbers = #tpu.dot_dimension_numbers<[1], [1], [0], [0], [0, 0, 1, 0], [], []>} : vector<8x32xbf16>, vector<8x32xbf16>, vector<8x8xf32> -> vector<8x8xf32>
    %cst_13 = arith.constant dense<0xFF800000> : vector<8xf32>
    %22 = vector.multi_reduction <maximumf>, %21, %cst_13 [1] : vector<8x8xf32> to vector<8xf32>
    %23 = vector.shape_cast %22 : vector<8xf32> to vector<8x1xf32>
    %24 = vector.broadcast %23 : vector<8x1xf32> to vector<8x8xf32>
    %25 = arith.subf %21, %24 : vector<8x8xf32>
    %26 = math.exp %25 : vector<8x8xf32>
    %cst_14 = arith.constant dense<0.000000e+00> : vector<8xf32>
    %27 = vector.multi_reduction <add>, %26, %cst_14 [1] : vector<8x8xf32> to vector<8xf32>
    %28 = vector.shape_cast %27 : vector<8xf32> to vector<8x1xf32>
    %cst_15 = arith.constant 1.000000e+00 : f32
    %29 = vector.broadcast %cst_15 : f32 to vector<8x1xf32>
    %30 = arith.divf %29, %28 : vector<8x1xf32>
    %31 = vector.broadcast %30 : vector<8x1xf32> to vector<8x8xf32>
    %32 = arith.mulf %26, %31 : vector<8x8xf32>
    %33 = arith.truncf %32 : vector<8x8xf32> to vector<8x8xbf16>
    %cst_16 = arith.constant dense<0.000000e+00> : vector<8x32xf32>
    %34 = tpu.matmul %33, %20, %cst_16 {dimension_numbers = #tpu.dot_dimension_numbers<[1], [0], [0], [1], [0, 0, 1, 1], [], []>} : vector<8x8xbf16>, vector<8x32xbf16>, vector<8x32xf32> -> vector<8x32xf32>
    %c0_17 = arith.constant 0 : index
    %c0_18 = arith.constant 0 : index
    %c0_19 = arith.constant 0 : index
    %35 = vector.load %arg9[%c0_17, %c0_18, %c0_19] : memref<1x8x32xf32, #tpu.memory_space<vmem>>, vector<1x8x32xf32>
    %36 = vector.shape_cast %35 : vector<1x8x32xf32> to vector<8x32xf32>
    %37 = vector.shape_cast %34 : vector<8x32xf32> to vector<1x8x32xf32>
    tpu.vector_store %arg9[%c0_17, %c0_18, %c0_19], %37 {strides = array<i32>} : memref<1x8x32xf32, #tpu.memory_space<vmem>>, vector<1x8x32xf32>,
    %c0_20 = arith.constant 0 : index
    %c0_21 = arith.constant 0 : index
    %c0_22 = arith.constant 0 : index
    %38 = vector.load %arg10[%c0_20, %c0_21, %c0_22] : memref<1x8x8xf32, #tpu.memory_space<vmem>>, vector<1x8x8xf32>
    %39 = vector.shape_cast %38 : vector<1x8x8xf32> to vector<8x8xf32>
    %40 = vector.shape_cast %32 : vector<8x8xf32> to vector<1x8x8xf32>
    tpu.vector_store %arg10[%c0_20, %c0_21, %c0_22], %40 {strides = array<i32>} : memref<1x8x8xf32, #tpu.memory_space<vmem>>, vector<1x8x8xf32>,
    return
  }
  func.func @transform_0(%arg0: i32, %arg1: i32) -> (i32, i32, i32) {
    %c0_i32 = arith.constant 0 : i32
    %c0_i32_0 = arith.constant 0 : i32
    %c0_i32_1 = arith.constant 0 : i32
    return %arg0, %c0_i32, %c0_i32_0 : i32, i32, i32
  }
  func.func @transform_1(%arg0: i32, %arg1: i32) -> (i32, i32) {
    %c0_i32 = arith.constant 0 : i32
    %c0_i32_0 = arith.constant 0 : i32
    %c0_i32_1 = arith.constant 0 : i32
    return %c0_i32, %c0_i32_0 : i32, i32
  }
  func.func @transform_2(%arg0: i32, %arg1: i32) -> (i32, i32) {
    %c0_i32 = arith.constant 0 : i32
    %c0_i32_0 = arith.constant 0 : i32
    %c0_i32_1 = arith.constant 0 : i32
    return %c0_i32, %c0_i32_0 : i32, i32
  }
  func.func @transform_3(%arg0: i32, %arg1: i32) -> (i32, i32) {
    %c0_i32 = arith.constant 0 : i32
    %c0_i32_0 = arith.constant 0 : i32
    %c0_i32_1 = arith.constant 0 : i32
    return %c0_i32, %c0_i32_0 : i32, i32
  }
  func.func @transform_4(%arg0: i32, %arg1: i32) -> (i32, i32) {
    %c0_i32 = arith.constant 0 : i32
    %c0_i32_0 = arith.constant 0 : i32
    %c0_i32_1 = arith.constant 0 : i32
    return %c0_i32, %c0_i32_0 : i32, i32
  }
  func.func @transform_5(%arg0: i32, %arg1: i32) -> (i32, i32) {
    %c0_i32 = arith.constant 0 : i32
    %c0_i32_0 = arith.constant 0 : i32
    %c0_i32_1 = arith.constant 0 : i32
    return %c0_i32, %c0_i32_0 : i32, i32
  }
  func.func @transform_6(%arg0: i32, %arg1: i32) -> (i32, i32) {
    %c0_i32 = arith.constant 0 : i32
    %c0_i32_0 = arith.constant 0 : i32
    %c0_i32_1 = arith.constant 0 : i32
    return %c0_i32, %c0_i32_0 : i32, i32
  }
  func.func @transform_7(%arg0: i32, %arg1: i32) -> (i32, i32, i32) {
    %c0_i32 = arith.constant 0 : i32
    %c0_i32_0 = arith.constant 0 : i32
    return %arg0, %arg1, %c0_i32 : i32, i32, i32
  }
  func.func @transform_8(%arg0: i32, %arg1: i32) -> (i32, i32, i32) {
    %c0_i32 = arith.constant 0 : i32
    %c0_i32_0 = arith.constant 0 : i32
    return %arg0, %arg1, %c0_i32 : i32, i32, i32
  }
}

</mosaic_0001>

<bundles_post_ra>
// kernel: tpu_custom_call.1
= control target key start
LH: loop header
LB: loop body
LE: loop exit
PB: predicated region body
PF: predicated region fallthrough
CT: control target
= control target key end

     0   :  { %s1624_s0 = inlined_call_operand.hbm [shape: f32[2,8,32], index: 0, kind: input, shape index: {}]   ;;  %s1625_s1 = inlined_call_operand.hbm [shape: bf16[32,32], index: 1, kind: input, shape index: {}]   ;;  %s1626_s2 = inlined_call_operand.vmem [shape: f32[1,32], index: 2, kind: input, shape index: {}]   ;;  %s1627_s3 = inlined_call_operand.hbm [shape: bf16[32,32], index: 3, kind: input, shape index: {}]   ;;  %s1628_s4 = inlined_call_operand.vmem [shape: f32[1,32], index: 4, kind: input, shape index: {}]   ;;  %s1629_s5 = inlined_call_operand.hbm [shape: bf16[32,32], index: 5, kind: input, shape index: {}]   ;;  %s1630_s6 = inlined_call_operand.vmem [shape: f32[1,32], index: 6, kind: input, shape index: {}]   ;;  %s1631_s7 = inlined_call_operand.hbm [shape: f32[2,8,32], index: 7, kind: output, shape index: {0}]   ;;  %s1632_s8 = inlined_call_operand.hbm [shape: f32[2,8,8], index: 8, kind: output, shape index: {1}]  }
   0x1   :  { %1638 = sst [smem:[#allocation20_spill]] %s1625_s1 }
   0x2   :  { %1639 = sst [smem:[#allocation21_spill]] %s1627_s3 }
   0x3   :  { %1640 = sst [smem:[#allocation22_spill]] %s1629_s5 }
   0x4   :  { %14 = vsyncpa [#allocation4], 0 }
   0x5   :  { %16 = vsyncpa [#allocation4 + $0x1], 0 }
   0x6   :  { %17 = vsyncpa [#allocation7], 0 }
   0x7   :  { %18 = vsyncpa [#allocation10], 0 }
   0x8   :  { %19 = vsyncpa [#allocation5], 0 }
   0x9   :  { %21 = vsyncpa [#allocation5 + $0x1], 0 }
   0xa   :  { %22 = vsyncpa [#allocation13], 0 }
   0xb   :  { %24 = vsyncpa [#allocation13 + $0x1], 0  ;;  %s1375_s27 = smov 0   ;;  %s1377_s28 = smov 0  }
   0xc   :  { %s1379_s29 = smov 0   ;;  %s1381_s30 = smov 0  }
   0xd   :  { %s1383_s9 = smov 0   ;;  %s1385_s10 = smov 0  }
   0xe LB: > { %s897_s11 = sadd.s32 4294967295, %s1318_s10   ;;  %s898_s12 = sadd.s32 4294967294, %s1318_s10   ;;  %s1318_s10 = sphi %s1385_s10, %s30_s10   ;;  %s1314_s9 = sphi %s1383_s9, %s1663_s9   ;;  %s1310_s30 = sphi %s1381_s30, %s1662_s30   ;;  %s1306_s29 = sphi %s1379_s29, %s1661_s29   ;;  %s1302_s28 = sphi %s1377_s28, %s1660_s28   ;;  %s1298_s27 = sphi %s1375_s27, %s1659_s27  }
   0xf   : > { %p62_p0 = scmp.ne.s32.totalorder %s1302_s28, %s1298_s27  ;;  %p1409_p1 = scmp.eq.s32.totalorder %s897_s11, 0 }
  0x10   : > { %p1413_p2 = scmp.eq.s32.totalorder %s897_s11, 1  ;;  %p220_p3 = scmp.eq.s32.totalorder %s898_s12, 1 }
  0x11   : > { %s1641_s13 = scalar_select %p1409_p1, 1, 0 }
  0x12   : > { %p1419_p4 = por %p1409_p1, %p62_p0  ;;  %p899_p5 = scmp.ge.s32.totalorder %s1318_s10, 1 }
  0x13   : > { %p1424_p6 = por %p220_p3, %p62_p0  ;;  %p255_p7 = scmp.lt.s32.totalorder %s1318_s10, 3 }
  0x14   : > { %s1643_s15 = scalar_select %p1419_p4, 1, 0 }
  0x15   : > { %s1644_s16 = scalar_select %p1424_p6, 1, 0 }
  0x16   : > { %p1429_p8 = pnand %p899_p5, %p255_p7  ;;  %s1320_s18 = smov [#allocation6]  }
  0x17   : > { %s267_s19 = sshll.u32 %s1320_s18, 4  ;;  %s1321_s21 = smov [#allocation8]   ;;  %s268_s19 = int_to_ptr.vmem [resolvable:$true] %s267_s19 }
  0x18   : > { %s1645_s17 = scalar_select %p1429_p8, 1, 0 }
  0x19   : > { %p1000_p9 = pneg %p1429_p8  ;;  %s283_s22 = sshll.u32 %s1321_s21, 4  ;;  %s284_s22 = int_to_ptr.vmem [resolvable:$true] %s283_s22 }
  0x1a   : > { %s1322_s23 = smov [#allocation9]   ;;  %s1105_s25 = scalar_lea.vmem %s268_s19, 256 }
  0x1b   : > { %p1438_p11 = pnand %p1000_p9, %p1409_p1  ;;  %s299_s24 = sshll.u32 %s1322_s23, 4  ;;  %s300_s24 = int_to_ptr.vmem [resolvable:$true] %s299_s24 }
  0x1c   : > { %p1106_p13 = scmp.ne.s32.totalorder %s268_s19, %s1105_s25  ;;  %p1113_p5 = scmp.lt.s32.totalorder %s268_s19, %s268_s19 }
  0x1d   : > { %p1096_p12 = pneg %p1438_p11  ;;  %p1114_p7 = scmp.lt.s32.totalorder %s1105_s25, %s1105_s25 }
  0x1f   : > { %p1108_p0 = pnand %p1106_p13, %p1096_p12  ;;  %p1115_p9 = por %p1114_p7, %p1113_p5 }
  0x21   : > { %p1109_p3 = pneg %p1108_p0 }
  0x23   : > { %p1116_p10 = pnand %p1115_p9, %p1109_p3 }
  0x25   : > { %1119 = shalt.err (!%p1116_p10)
}
  0x26   : > { %s1323_s26 = smov 64   ;;  %s1324_s11 = smov 4  }
  0x27   : > { %s1647_s1 = sld [smem:[#allocation20_spill]]  ;;  %s1131_s21 = scalar_lea.vmem %s284_s22, 256 }
  0x28   : > { %p1132_p6 = scmp.ne.s32.totalorder %s284_s22, %s1131_s21  ;;  %p1139_p1 = scmp.lt.s32.totalorder %s284_s22, %s284_s22 }
  0x29   : > { %p1140_p4 = scmp.lt.s32.totalorder %s1131_s21, %s1131_s21 }
  0x2a   : > { %p1134_p13 = pnand %p1132_p6, %p1096_p12 }
  0x2b   : > { %p1141_p5 = por %p1140_p4, %p1139_p1 }
  0x2c   : > { %p1135_p0 = pneg %p1134_p13 }
  0x2d   : > { %1003 = dma.hbm_to_vmem [thread:$0]  (!%p1438_p11), %s1647_s1, 256, %s268_s19, [#allocation7], %s1323_s26, %s1323_s26, %s1324_s11  }
  0x2e   : > { %p1142_p3 = pnand %p1141_p5, %p1135_p0 }
  0x30   : > { %1145 = shalt.err (!%p1142_p3)
}
  0x31   : > { %s1648_s3 = sld [smem:[#allocation21_spill]]  ;;  %s1157_s19 = scalar_lea.vmem %s300_s24, 256 }
  0x32   : > { %p1158_p10 = scmp.ne.s32.totalorder %s300_s24, %s1157_s19  ;;  %p1165_p9 = scmp.lt.s32.totalorder %s300_s24, %s300_s24 }
  0x33   : > { %p1166_p13 = scmp.lt.s32.totalorder %s1157_s19, %s1157_s19 }
  0x34   : > { %p1160_p7 = pnand %p1158_p10, %p1096_p12 }
  0x35   : > { %p1167_p8 = por %p1166_p13, %p1165_p9 }
  0x36   : > { %p1161_p6 = pneg %p1160_p7 }
  0x37   : > { %1006 = dma.hbm_to_vmem [thread:$0]  (!%p1438_p11), %s1648_s3, 256, %s284_s22, [#allocation7], %s1323_s26, %s1323_s26, %s1324_s11  }
  0x38   : > { %p1168_p1 = pnand %p1167_p8, %p1161_p6 }
  0x3a   : > { %1171 = shalt.err (!%p1168_p1)
}
  0x3b   : > { %s1649_s5 = sld [smem:[#allocation22_spill]]  ;;  %s49_s22 = sadd.s32 1, %s1306_s29 }
  0x3c   : > { %s42_s21 = sadd.s32 1, %s1314_s9  ;;  %p56_p4 = scmp.ne.s32.totalorder %s1306_s29, %s1302_s28 }
  0x3d   : > { %p44_p8 = scmp.ge.s32.totalorder %s42_s21, 2  ;;  %p57_p12 = scmp.eq.s32.totalorder %s1318_s10, 0 }
  0x3e   : > { %p1475_p0 = por %p1413_p2, %p56_p4  ;;  %p1024_p5 = scmp.lt.s32.totalorder %s1318_s10, 2 }
  0x3f   : > { %s1665_s21 = smov (%p44_p8, %s42_s21), 0  ;;  %p58_p3 = por %p57_p12, %p56_p4 }
  0x40   : > { %1651 = sst [smem:[#allocation19_spill]] %s1665_s21  ;;  %s316_s23 = sand.u32 1, %s1306_s29  }
  0x41   : > { %1009 = dma.hbm_to_vmem [thread:$0]  (!%p1438_p11), %s1649_s5, 256, %s300_s24, [#allocation10], %s1323_s26, %s1323_s26, %s1324_s11  }
  0x42   : > { %s46_s25 = ssub.s32 %s1314_s9, %s1665_s21  ;;  %s904_s24 = sshll.u32 %s316_s23, 3 }
  0x43   : > { %p47_p10 = scmp.eq.s32.totalorder %s46_s25, 0  ;;  %s905_s26 = sshll.u32 %s1314_s9, 7 }
  0x44   : > { %s325_s14 = scalar_lea.hbm %s1624_s0, %s905_s26  ;;  %s320_s18 = scalar_lea.vmem [#allocation3], %s904_s24 }
  0x45   : > { %s1487_s11 = scalar_select %p47_p10, %s1306_s29, %s49_s22  }
  0x46   : > { %s327_s1 = sshll.u32 %s320_s18, 4  ;;  %p1494_p2 = pnand %p1024_p5, %p58_p3  ;;  %s328_s1 = int_to_ptr.vmem [resolvable:$true] %s327_s1 }
  0x47   : > { %s317_s5 = scalar_lea.sflag [#allocation4], %s316_s23  ;;  %s1185_s25 = scalar_lea.vmem %s328_s1, 128 }
  0x48   : > { %p1174_p11 = pneg %p1494_p2  ;;  %p1186_p7 = scmp.ne.s32.totalorder %s328_s1, %s1185_s25 }
  0x49   : > { %s1325_s22 = smov [#allocation3]  }
  0x4a   : > { %p1188_p6 = pnand %p1186_p7, %p1174_p11  ;;  %s1190_s21 = sshll.u32 %s1325_s22, 4  ;;  %s1191_s21 = int_to_ptr.vmem [resolvable:$false] %s1190_s21 }
  0x4b   : > { %s1192_s26 = scalar_lea.vmem %s1191_s21, 256  ;;  %p1193_p13 = scmp.lt.s32.totalorder %s328_s1, %s1191_s21 }
  0x4c   : > { %p1189_p9 = pneg %p1188_p6  ;;  %p1194_p1 = scmp.lt.s32.totalorder %s1192_s26, %s1185_s25 }
  0x4e   : > { %p1195_p4 = por %p1194_p1, %p1193_p13 }
  0x50   : > { %p1196_p8 = pnand %p1195_p4, %p1189_p9 }
  0x52   : > { %1199 = shalt.err (!%p1196_p8)
}
  0x53   : > { %1013 = dma.hbm_to_vmem [thread:$0]  (!%p1494_p2), %s325_s14, 128, %s328_s1, %s317_s5  }
  0x54   : > { %p1653_p12 = scmp.ne.s32.totalorder %s1645_s17, 0 }
  0x55   : > { %s1505_s23 = sand.u32 (!%p1653_p12), 1, %s1302_s28   ;;  %p1654_p5 = scmp.ne.s32.totalorder (!%p1653_p12), %s1643_s15, 0 }
  0x56   : > { %336 = sbr.rel (%p1653_p12) target bundleno = 1036 (0x40c), region = 48  ;;  %s1508_s24 = sshll.u32 (!%p1653_p12), %s1505_s23, 3 }
  0x57   : > { %s339_s21 = scalar_lea.sflag (!%p1653_p12), [#allocation4], %s1505_s23  ;;  %s342_s19 = scalar_lea.vmem (!%p1653_p12), [#allocation3], %s1508_s24 }
  0x5b   : > { %1277 = dma.done.wait (%p1654_p5), %s339_s21, 128  }
  0x5c   : > { %1279 = vsyncadd (%p1654_p5), %s339_s21, 4294967168  ;;  %p1655_p3 = scmp.ne.s32.totalorder %s1641_s13, 0 }
  0x5e   : > { %1281 = dma.done.wait (%p1655_p3), [#allocation7], 512  }
  0x5f   : > { %1283 = vsyncadd (%p1655_p3), [#allocation7], 4294966784 }
  0x60   : > { %1285 = dma.done.wait (%p1655_p3), [#allocation10], 256  }
  0x61   : > { %1287 = vsyncadd (%p1655_p3), [#allocation10], 4294967040  ;;  %v1326_v0 = vmov 0.0   ;;  %vm1327_vm0 = vmmov 0   ;;  %v1084_v1 = vld [vmem:[#allocation8 + $0x8] sm:$0xff]   ;;  %v1085_v2 = vld [vmem:[#allocation8] sm:$0xff]  }
  0x62   : > { %946 = vmatprep.subr.bf16.mxu0 %v1326_v0  ;;  %950 = vmatprep.mubr.msk.bf16.mxu0 %vm1327_vm0, %v1326_v0  ;;  %v397_v3 = vld [vmem:[%s342_s19] sm:$0xff]  ;;  %vm422_vm1 = vcmask 261120   ;;  %v1086_v5 = vld [vmem:[#allocation6 + $0x8] sm:$0xff]   ;;  %v1087_v6 = vld [vmem:[#allocation6] sm:$0xff]   ;;  %vm530_vm2 = vcmask 257024   ;;  %vm674_vm3 = vcmask 1043456  }
  0x63   : > { %954 = vmatprep.subr.bf16.mxu1 %v1326_v0  ;;  %958 = vmatprep.mubr.msk.bf16.mxu1 %vm1327_vm0, %v1326_v0  ;;  %v398_v4 = vpack.c.bf16 %v397_v3, %v397_v3  ;;  %v1088_v7 = vld [vmem:[#allocation9 + $0x8] sm:$0xff]   ;;  %v1089_v8 = vld [vmem:[#allocation9] sm:$0xff]   ;;  %vm657_vm4 = vcmask 64512   ;;  %s391_s12 = scalar_lea.vmem [#allocation12], %s1508_s24  ;;  %s929_s14 = sshll.u32 %s1310_s30, 7 }
  0x64   : > { %947 = vmatpush3.bf16.msra.mxu0 %v1084_v1  ;;  %955 = vmatpush3.bf16.msra.mxu1 %v1088_v7  ;;  %v913_v9 = vld [vmem:[%s1628_s4] ss:$0 sm:$0xff]  ;;  %s752_s22 = scalar_lea.hbm %s1632_s8, %s929_s14  ;;  %s754_s26 = sshll.u32 %s391_s12, 4  ;;  %s755_s26 = int_to_ptr.vmem [resolvable:$true] %s754_s26 }
  0x65   : > { %948 = vmatprep.subr.bf16.mxu0 %v1326_v0  ;;  %956 = vmatprep.subr.bf16.mxu1 %v1326_v0  ;;  %v921_v16 = vld [vmem:[%s1626_s2] ss:$0 sm:$0xff]  ;;  %s726_s21 = scalar_lea.sflag [#allocation13], %s1505_s23  ;;  %s1200_s19 = scalar_lea.vmem %s755_s26, 128 }
  0x66   : > { %v917_v26 = vld [vmem:[%s1630_s6] ss:$0 sm:$0xff]  ;;  %p1201_p10 = scmp.ne.s32.totalorder %s755_s26, %s1200_s19  ;;  %s1328_s1 = smov [#allocation12]  }
  0x67   : > { %s1204_s3 = sshll.u32 %s1328_s1, 4  ;;  %s1205_s3 = int_to_ptr.vmem [resolvable:$false] %s1204_s3 }
  0x68   : > { %949 = vmatpush3.bf16.msra.mxu0 %v1085_v2  ;;  %957 = vmatpush3.bf16.msra.mxu1 %v1089_v8  ;;  %p1202_p2 = pnand %p1201_p10, %p1475_p0  ;;  %s1206_s5 = scalar_lea.vmem %s1205_s3, 256 }
  0x69   : > { %962 = vmatprep.subr.bf16.mxu0 %v1326_v0  ;;  %970 = vmatprep.subr.bf16.mxu1 %v1326_v0  ;;  %p1207_p7 = scmp.lt.s32.totalorder %s755_s26, %s1205_s3  ;;  %p1208_p6 = scmp.lt.s32.totalorder %s1206_s5, %s1200_s19 }
  0x6a   : > { %p1203_p11 = pneg %p1202_p2 }
  0x6b   : > { %951 = vmatmul.mubr.msk.bf16.vlgmr.msra.gmra.mxu0 %vm422_vm1, %v398_v4  ;;  %959 = vmatmul.mubr.msk.bf16.vlgmr.msra.gmra.mxu1 %vm422_vm1, %v398_v4  ;;  %p1209_p9 = por %p1208_p6, %p1207_p7 }
  0x6c   : > { %963 = vmatpush3.bf16.msra.mxu0 %v1086_v5  ;;  %966 = vmatprep.mubr.msk.bf16.mxu0 %vm1327_vm0, %v1326_v0 }
  0x6d   : > { %964 = vmatprep.subr.bf16.mxu0 %v1326_v0  ;;  %972 = vmatprep.mubr.msk.bf16.mxu1 %vm1327_vm0, %v1326_v0  ;;  %p1210_p13 = pnand %p1209_p9, %p1203_p11 }
  0x70   : > { %965 = vmatpush3.bf16.msra.mxu0 %v1087_v6 }
  0x71   : > { %976 = vmatprep.subr.bf16.mxu0 %v1326_v0 }
  0x73   : > { %967 = vmatmul.mubr.msk.bf16.vlgmr.msra.gmra.mxu0 %vm422_vm1, %v398_v4 }
  0x74   : > { %978 = vmatprep.mubr.msk.bf16.mxu0 %vm1327_vm0, %v1326_v0 }
 0x12b   : > { %v460_v10 = vpop.f32.mrf.mxu0  ;;  %v523_v27 = vpop.f32.mrf.mxu1 }
 0x12c   : > { %v461_v11 = vadd.f32 %v913_v9, %v460_v10  ;;  %v524_v28 = vadd.f32 %v917_v26, %v523_v27 }
 0x12d   : > { %v952_v12 = vpop.f32.mrf.mxu0  ;;  %v960_v29 = vpop.f32.mrf.mxu1 }
 0x12e   : > { %v529_v13 = vpack.c.bf16 %v461_v11, %v461_v11  ;;  %v532_v30 = vpack.c.bf16 %v524_v28, %v524_v28 }
 0x12f   : > { %v463_v14 = vpop.f32.mrf.mxu0  ;;  %v526_v31 = vpop.f32.mrf.mxu1 }
 0x130   : > { %531 = vst.msk [vmem:[#allocation2] sm:$0xf] %vm530_vm2, %v529_v13  ;;  %534 = vst.msk [vmem:[#allocation2 + $0x4] sm:$0xf] %vm530_vm2, %v532_v30 }
 0x131   : > { %v953_v15 = vpop.f32.mrf.mxu0  ;;  %v961_v32 = vpop.f32.mrf.mxu1 }
 0x133   : > { %v600_v17 = vpop.f32.mrf.mxu0 }
 0x134   : > { %v601_v18 = vadd.f32 %v921_v16, %v600_v17 }
 0x135   : > { %v968_v19 = vpop.f32.mrf.mxu0 }
 0x136   : > { %v606_v22 = vmul.f32 0.17677669, %v601_v18 }
 0x137   : > { %v603_v20 = vpop.f32.mrf.mxu0  ;;  %v608_v21 = vld [vmem:[#allocation2] sm:$0xf]  ;;  %v610_v33 = vld [vmem:[#allocation2 + $0x4] sm:$0xf] }
 0x138   : > { %v615_v23 = vsel %vm422_vm1, %v608_v21, 0  ;;  %v607_v25 = vpack.c.bf16 %v606_v22, %v606_v22  ;;  %v676_v34 = vsel %vm674_vm3, %v610_v33, 0 }
 0x139   : > { %971 = vmatpush3.bf16.xpose.msra.mxu1 %v615_v23  ;;  %v969_v24 = vpop.f32.mrf.mxu0  ;;  %977 = vmatpush3.bf16.msra.mxu0 %v676_v34 }
 0x140   : > { %973 = vmatmul.mubr.msk.bf16.vlgmr.msra.gmra.mxu1 %vm422_vm1, %v607_v25 }
 0x200   : > { %v651_v35 = vpop.f32.mrf.mxu1 }
 0x201   : > { %v658_v36 = vsel %vm657_vm4, %v651_v35, -inf }
 0x202   : > { %659 = vmax.xlane.f32.xlu0 %v658_v36  ;;  %v974_v37 = vpop.f32.mrf.mxu1 }
 0x204   : > { %v654_v38 = vpop.f32.mrf.mxu1 }
 0x206   : > { %v975_v39 = vpop.f32.mrf.mxu1 }
 0x28b   : > { %v660_v40 = vpop.xlane.xlu0 %659 }
 0x28c   : > { %v661_v41 = vsub.f32 %v651_v35, %v660_v40 }
 0x28e   : > { %v662_v42 = vmul.f32 1.442695, %v661_v41 }
 0x290   : > { %1090 = vpow2.f32 %v662_v42 }
 0x29d   : > { %v1091_v43 = vpop.eup %1090 }
 0x29e   : > { %v664_v44 = vsel %vm657_vm4, %v1091_v43, 0.0 }
 0x29f   : > { %665 = vadd.xlane.f32.xlu0 %v664_v44 }
 0x328   : > { %v666_v45 = vpop.xlane.xlu0 %665 }
 0x329   : > { %1092 = vrcp.f32 %v666_v45 }
 0x336   : > { %v1093_v46 = vpop.eup %1092 }
 0x337   : > { %v669_v47 = vmul.f32 %v1093_v46, %v1091_v43 }
 0x339   : > { %v670_v48 = vpack.c.bf16 %v669_v47, %v669_v47  ;;  %719 = vst.msk [vmem:[%s391_s12] sm:$0xff] %vm657_vm4, %v669_v47 }
 0x33b   : > { %979 = vmatmul.mubr.msk.bf16.vlgmr.msra.gmra.mxu0 %vm657_vm4, %v670_v48 }
 0x33c   : > { %1213 = shalt.err (!%p1210_p13)
}
 0x33d   : > { %s1214_s13 = scalar_lea.hbm %s752_s22, 128  ;;  %s1218_s12 = scalar_lea.hbm %s1632_s8, 256 }
 0x33e   : > { %p1215_p1 = scmp.ne.s32.totalorder %s752_s22, %s1214_s13  ;;  %p1219_p12 = scmp.lt.s32.totalorder %s752_s22, %s1632_s8 }
 0x33f   : > { %p1220_p5 = scmp.lt.s32.totalorder %s1218_s12, %s1214_s13 }
 0x340   : > { %p1216_p4 = pnand %p1215_p1, %p1475_p0 }
 0x341   : > { %p1221_p3 = por %p1220_p5, %p1219_p12 }
 0x342   : > { %p1217_p8 = pneg %p1216_p4 }
 0x344   : > { %p1222_p10 = pnand %p1221_p3, %p1217_p8 }
 0x346   : > { %1225 = shalt.err (!%p1222_p10)
}
 0x347   : > { %997 = dma.vmem_to_hbm [thread:$0]  (%p1475_p0), %s755_s26, 128, %s752_s22, %s726_s21  }
 0x348   : > { %s384_s19 = scalar_lea.vmem [#allocation11], %s1508_s24  ;;  %s1575_s15 = scalar_lea.hbm %s1631_s7, %s929_s14 }
 0x349   : > { %s740_s1 = sshll.u32 %s384_s19, 4  ;;  %s721_s13 = scalar_lea.sflag [#allocation5], %s1505_s23  ;;  %s1577_s1 = int_to_ptr.vmem [resolvable:$true] %s740_s1 }
 0x34a   : > { %s1226_s17 = scalar_lea.vmem %s1577_s1, 128  ;;  %s1329_s30 = smov [#allocation11]  }
 0x34b   : > { %p1227_p2 = scmp.ne.s32.totalorder %s1577_s1, %s1226_s17  ;;  %s1230_s24 = sshll.u32 %s1329_s30, 4  ;;  %s1231_s24 = int_to_ptr.vmem [resolvable:$false] %s1230_s24 }
 0x34c   : > { %s1232_s14 = scalar_lea.vmem %s1231_s24, 256  ;;  %p1233_p6 = scmp.lt.s32.totalorder %s1577_s1, %s1231_s24 }
 0x34d   : > { %p1228_p11 = pnand %p1227_p2, %p1475_p0  ;;  %p1234_p9 = scmp.lt.s32.totalorder %s1232_s14, %s1226_s17 }
 0x34f   : > { %p1229_p7 = pneg %p1228_p11  ;;  %p1235_p13 = por %p1234_p9, %p1233_p6 }
 0x351   : > { %p1236_p1 = pnand %p1235_p13, %p1229_p7 }
 0x3fb   : > { %v712_v49 = vpop.f32.mrf.mxu0 }
 0x3fc   : > { %718 = vst.msk [vmem:[%s384_s19] sm:$0xff] %vm422_vm1, %v712_v49 }
 0x3fd   : > { %v980_v50 = vpop.f32.mrf.mxu0 }
 0x3fe   : > { %1239 = shalt.err (!%p1236_p1)
}
 0x3ff   : > { %s1240_s22 = scalar_lea.hbm %s1575_s15, 128  ;;  %s1244_s21 = scalar_lea.hbm %s1631_s7, 256 }
 0x400   : > { %p1241_p4 = scmp.ne.s32.totalorder %s1575_s15, %s1240_s22  ;;  %p1245_p5 = scmp.lt.s32.totalorder %s1575_s15, %s1631_s7 }
 0x401   : > { %p1246_p3 = scmp.lt.s32.totalorder %s1244_s21, %s1240_s22 }
 0x402   : > { %p1242_p8 = pnand %p1241_p4, %p1475_p0 }
 0x403   : > { %p1247_p10 = por %p1246_p3, %p1245_p5 }
 0x404   : > { %p1243_p12 = pneg %p1242_p8 }
 0x406   : > { %p1248_p2 = pnand %p1247_p10, %p1243_p12 }
 0x408   : > { %1251 = shalt.err (!%p1248_p2)
}
 0x409   : > { %996 = dma.vmem_to_hbm [thread:$0]  (%p1475_p0), %s1577_s1, 128, %s1575_s15, %s721_s13   ;;  %v715_v51 = vpop.f32.mrf.mxu0 }
 0x40b   : > { %v981_v52 = vpop.f32.mrf.mxu0 }
 0x40c PF: > { %s766_s25 = sand.u32 1, %s1298_s27   ;;  %p1656_p11 = scmp.ne.s32.totalorder %s1644_s16, 0 }
 0x40d   : > { %p1657_p7 = scmp.ge.s32.totalorder %s1318_s10, 2  ;;  %s767_s19 = scalar_lea.sflag [#allocation5], %s766_s25 }
 0x40f   : > { %p1015_p6 = pnand %p1657_p7, %p1656_p11 }
 0x411   : > { %p1016_p9 = pneg %p1015_p6 }
 0x413   : > { %1289 = dma.done.wait (%p1016_p9), %s767_s19, 128  }
 0x414   : > { %1291 = vsyncadd (%p1016_p9), %s767_s19, 4294967168  ;;  %s776_s3 = scalar_lea.sflag [#allocation13], %s766_s25 }
 0x415   : > { %1293 = dma.done.wait (%p1016_p9), %s776_s3, 128  }
 0x416   : > { %1295 = vsyncadd (%p1016_p9), %s776_s3, 4294967168  ;;  %s30_s10 = sadd.s32 1, %s1318_s10   ;;  %s1658_s20 = sld [smem:[#allocation19_spill]] }
 0x417   : > { %p27_p0 = scmp.ge.s32.totalorder %s30_s10, 4   ;;  %s1659_s27 = smov %s1302_s28 }
 0x418   : > { %s1660_s28 = smov %s1306_s29  ;;  %s1661_s29 = smov %s1487_s11 }
 0x419   : > { %s1662_s30 = smov %s1314_s9  ;;  %29 = sbr.rel (!%p27_p0) target bundleno = 14 (0xe), region = 129 }
 0x41c   : > { %s1663_s9 = smov %s1658_s20 }
 0x41e   :  { %781 = vsyncpa [#allocation4], 1 }
 0x41f   :  { %783 = vsyncpa [#allocation4 + $0x1], 1 }
 0x420   :  { %784 = vsyncpa [#allocation7], 1 }
 0x421   :  { %785 = vsyncpa [#allocation10], 1 }
 0x422   :  { %786 = vsyncpa [#allocation5], 1 }
 0x423   :  { %788 = vsyncpa [#allocation5 + $0x1], 1 }
 0x424   :  { %789 = vsyncpa [#allocation13], 1 }
 0x425   :  { %791 = vsyncpa [#allocation13 + $0x1], 1 }

</bundles_post_ra>
